<compile_context>
chip_gen: v6e
topology: v6e:2x2x1
jax: 0.10.0
libtpu: 0.0.40
codegen_flags: <defaults>
</compile_context>

<pallas_src>
import jax
import jax.numpy as jnp
from jax.experimental import pallas as pl
from jax.experimental.pallas import tpu as pltpu

_LANE = 128


def _linear_diag_kernel_bias(x_ref, w_ref, b_ref, o_ref):
    # x_ref: (tile_b, tile_f); w_ref/b_ref: (1, tile_f) -> broadcast over rows.
    # Multiply/add in the promoted dtype; cast only on the store.
    o_ref[...] = (x_ref[...] * w_ref[...] + b_ref[...]).astype(o_ref.dtype)


def _linear_diag_kernel_nobias(x_ref, w_ref, o_ref):
    o_ref[...] = (x_ref[...] * w_ref[...]).astype(o_ref.dtype)


def _sublane(dtype):
    """Minimum sublane multiple for the second-to-last dim of a block."""
    itemsize = jnp.dtype(dtype).itemsize
    if itemsize >= 4:
        return 8
    if itemsize == 2:
        return 16
    return 32


def _pick_tile(dim, align, max_tile):
    """Largest multiple of `align` that divides `dim` and is <= `max_tile`.

    Falls back to the full dim (a full-extent block is always legal, even if
    not (8,128)-aligned), so arbitrary user shapes still lower correctly.
    """
    if dim <= max_tile or dim % align != 0:
        return dim
    best = None
    t = align
    while t <= max_tile:
        if dim % t == 0:
            best = t
        t += align
    return best if best is not None else dim


def linear_diag(x, weight, bias=None, *, tile_b=None, tile_f=None,
                target_tile_bytes=4 * 1024 * 1024,
                vmem_limit_bytes=32 * 1024 * 1024):
    """Pallas implementation of LinearDiag.forward.

    x:      (B, F)
    weight: (F,)   diagonal scale (PyTorch init = ones)
    bias:   (F,) or None (PyTorch init = zeros when enabled)
    """
    assert x.ndim == 2 and x.shape[1] == weight.shape[0], \
        "x must be 2-D with x.shape[1] == num_feat"
    B, F = x.shape

    out_dtype = jnp.promote_types(x.dtype, weight.dtype)
    if bias is not None:
        assert bias.shape == (F,)
        out_dtype = jnp.promote_types(out_dtype, bias.dtype)

    # --- tile selection: large, aligned, lane-dense blocks ------------------
    if tile_f is None:
        tile_f = _pick_tile(F, _LANE, 4096)           # up to 4096 lanes per block
    assert tile_f == F or (F % tile_f == 0 and tile_f % _LANE == 0), \
        "tile_f must be a 128-multiple divisor of F (or F itself)"

    if tile_b is None:
        sub = _sublane(x.dtype)
        bytes_per_row = tile_f * max(jnp.dtype(x.dtype).itemsize,
                                     jnp.dtype(out_dtype).itemsize)
        max_rows = max(sub, target_tile_bytes // bytes_per_row)
        tile_b = _pick_tile(B, sub, min(int(max_rows), 1024))
    assert tile_b == B or (B % tile_b == 0 and tile_b % _sublane(x.dtype) == 0), \
        "tile_b must be a sublane-multiple divisor of B (or B itself)"

    grid = (B // tile_b, F // tile_f)

    x_spec = pl.BlockSpec((tile_b, tile_f), lambda i, j: (i, j))
    p_spec = pl.BlockSpec((1, tile_f), lambda i, j: (0, j))   # params: row, reused over i
    o_spec = pl.BlockSpec((tile_b, tile_f), lambda i, j: (i, j))

    operands = [x, weight.reshape(1, F)]
    in_specs = [x_spec, p_spec]
    kernel = _linear_diag_kernel_nobias
    flops = B * F
    bytes_accessed = (B * F * (jnp.dtype(x.dtype).itemsize
                               + jnp.dtype(out_dtype).itemsize)
                      + F * jnp.dtype(weight.dtype).itemsize)
    if bias is not None:
        operands.append(bias.reshape(1, F))
        in_specs.append(p_spec)
        kernel = _linear_diag_kernel_bias
        flops += B * F
        bytes_accessed += F * jnp.dtype(bias.dtype).itemsize

    return pl.pallas_call(
        kernel,
        out_shape=jax.ShapeDtypeStruct((B, F), out_dtype),
        grid_spec=pltpu.PrefetchScalarGridSpec(
            num_scalar_prefetch=0,
            grid=grid,
            in_specs=in_specs,
            out_specs=o_spec,
        ),
        compiler_params=pltpu.CompilerParams(
            dimension_semantics=("parallel", "parallel"),
            vmem_limit_bytes=vmem_limit_bytes,
        ),
        cost_estimate=pl.CostEstimate(
            flops=int(flops), transcendentals=0,
            bytes_accessed=int(bytes_accessed)),
    )(*operands)


if __name__ == "__main__":
    # Small shapes consistent with the module.
    B, F = 32, 512
    key = jax.random.PRNGKey(0)
    x = jax.random.normal(key, (B, F), dtype=jnp.float32)

    # Deterministic parameter init, exactly as LinearDiag.__init__:
    weight = jnp.ones((F,), dtype=jnp.float32)
    bias = jnp.zeros((F,), dtype=jnp.float32)

    # Default module config: bias=False -> specialized 2-arg kernel.
    out_nb = jax.block_until_ready(linear_diag(x, weight))
    ref_nb = x * weight[None, :]
    assert out_nb.shape == (B, F)
    assert jnp.allclose(out_nb, ref_nb, atol=1e-6), "no-bias mismatch vs reference"

    # bias=True path.
    out_b = jax.block_until_ready(linear_diag(x, weight, bias))
    ref_b = x * weight[None, :] + bias[None, :]
    assert jnp.allclose(out_b, ref_b, atol=1e-6), "bias mismatch vs reference"

    # Exercise the 2-D tiled path (multi-step grid) with explicit small tiles.
    B2, F2 = 128, 512
    x2 = jax.random.normal(jax.random.PRNGKey(1), (B2, F2), dtype=jnp.float32)
    w2 = jax.random.normal(jax.random.PRNGKey(2), (F2,), dtype=jnp.float32)
    b2 = jax.random.normal(jax.random.PRNGKey(3), (F2,), dtype=jnp.float32)
    out2 = jax.block_until_ready(linear_diag(x2, w2, b2, tile_b=32, tile_f=128))
    ref2 = x2 * w2[None, :] + b2[None, :]
    assert jnp.allclose(out2, ref2, atol=1e-5), "tiled-grid mismatch vs reference"

    print("KERNEL_OK")
</pallas_src>

<mosaic_0001>
module attributes {stable_mosaic.version = 11 : i64} {
  func.func @_linear_diag_kernel_nobias(%arg0: i32, %arg1: i32, %arg2: memref<32x512xf32, #tpu.memory_space<vmem>>, %arg3: memref<1x512xf32, #tpu.memory_space<vmem>>, %arg4: memref<32x512xf32, #tpu.memory_space<vmem>>) attributes {dimension_semantics = [#tpu.dimension_semantics<parallel>, #tpu.dimension_semantics<parallel>], iteration_bounds = array<i64: 1, 1>, scalar_prefetch = 0 : i64, scratch_operands = 0 : i64, tpu.core_type = #tpu.core_type<tc>, window_params = [{transform_indices = @transform_0, window_bounds = array<i64: 32, 512>}, {transform_indices = @transform_1, window_bounds = array<i64: 1, 512>}, {transform_indices = @transform_2, window_bounds = array<i64: 32, 512>}]} {
    %c0 = arith.constant 0 : index
    %c0_0 = arith.constant 0 : index
    %0 = vector.load %arg2[%c0, %c0_0] : memref<32x512xf32, #tpu.memory_space<vmem>>, vector<32x512xf32>
    %c0_1 = arith.constant 0 : index
    %c0_2 = arith.constant 0 : index
    %1 = vector.load %arg3[%c0_1, %c0_2] : memref<1x512xf32, #tpu.memory_space<vmem>>, vector<1x512xf32>
    %2 = vector.broadcast %1 : vector<1x512xf32> to vector<32x512xf32>
    %3 = arith.mulf %0, %2 : vector<32x512xf32>
    %c0_3 = arith.constant 0 : index
    %c0_4 = arith.constant 0 : index
    %4 = vector.load %arg4[%c0_3, %c0_4] : memref<32x512xf32, #tpu.memory_space<vmem>>, vector<32x512xf32>
    tpu.vector_store %arg4[%c0_3, %c0_4], %3 {strides = array<i32>} : memref<32x512xf32, #tpu.memory_space<vmem>>, vector<32x512xf32>,
    return
  }
  func.func @transform_0(%arg0: i32, %arg1: i32) -> (i32, i32) {
    %c0_i32 = arith.constant 0 : i32
    return %arg0, %arg1 : i32, i32
  }
  func.func @transform_1(%arg0: i32, %arg1: i32) -> (i32, i32) {
    %c0_i32 = arith.constant 0 : i32
    %c0_i32_0 = arith.constant 0 : i32
    return %c0_i32, %arg1 : i32, i32
  }
  func.func @transform_2(%arg0: i32, %arg1: i32) -> (i32, i32) {
    %c0_i32 = arith.constant 0 : i32
    return %arg0, %arg1 : i32, i32
  }
}

</mosaic_0001>

<bundles_post_ra>
// kernel: tpu_custom_call.1
= control target key start
LH: loop header
LB: loop body
LE: loop exit
PB: predicated region body
PF: predicated region fallthrough
CT: control target
= control target key end

     0   :  { %7 = vsyncpa [#allocation3], 0  ;;  %s232_s0 = inlined_call_operand.hbm [shape: f32[32,512], index: 0, kind: input, shape index: {}]   ;;  %s233_s1 = inlined_call_operand.hbm [shape: f32[1,512], index: 1, kind: input, shape index: {}]   ;;  %s234_s2 = inlined_call_operand.hbm [shape: f32[32,512], index: 2, kind: output, shape index: {}]  }
   0x1   :  { %8 = vsyncpa [#allocation6], 0 }
   0x2   :  { %9 = vsyncpa [#allocation4], 0  ;;  %s197_s9 = smov [#allocation2]  }
   0x3   :  { %s15_s10 = sshll.u32 %s197_s9, 4  ;;  %s16_s10 = int_to_ptr.vmem [resolvable:$true] %s15_s10 }
   0x4   :  { %s139_s11 = scalar_lea.vmem %s16_s10, 2048  ;;  %p144_p1 = scmp.lt.s32.totalorder %s16_s10, %s16_s10 }
   0x5   :  { %p140_p0 = scmp.ne.s32.totalorder %s16_s10, %s139_s11  ;;  %p145_p2 = scmp.lt.s32.totalorder %s139_s11, %s139_s11 }
   0x7   :  { %p146_p3 = por %p145_p2, %p144_p1 }
   0x9   :  { %p147_p4 = pnand %p146_p3, %p140_p0 }
   0xb   :  { %150 = shalt.err (!%p147_p4)
}
   0xc   :  { %s198_s12 = smov 512   ;;  %s199_s13 = smov 32  }
   0xd   :  { %21 = dma.hbm_to_vmem [thread:$0]  %s232_s0, 2048, %s16_s10, [#allocation3], %s198_s12, %s198_s12, %s199_s13  }
   0xe   :  { %s200_s16 = smov [#allocation5]  }
   0xf   :  { %s28_s17 = sshll.u32 %s200_s16, 4  ;;  %s29_s17 = int_to_ptr.vmem [resolvable:$true] %s28_s17 }
  0x10   :  { %s159_s18 = scalar_lea.vmem %s29_s17, 64  ;;  %p164_p6 = scmp.lt.s32.totalorder %s29_s17, %s29_s17 }
  0x11   :  { %p160_p5 = scmp.ne.s32.totalorder %s29_s17, %s159_s18  ;;  %p165_p7 = scmp.lt.s32.totalorder %s159_s18, %s159_s18 }
  0x13   :  { %p166_p8 = por %p165_p7, %p164_p6 }
  0x15   :  { %p167_p9 = pnand %p166_p8, %p160_p5 }
  0x17   :  { %170 = shalt.err (!%p167_p9)
}
  0x18   :  { %31 = dma.hbm_to_vmem [thread:$0]  %s233_s1, 64, %s29_s17, [#allocation6]  }
  0x19   :  { %191 = dma.done.wait [#allocation3], 2048  }
  0x1a   :  { %192 = vsyncadd [#allocation3], 4294965248 }
  0x1b   :  { %193 = dma.done.wait [#allocation6], 64  }
  0x1c   :  { %194 = vsyncadd [#allocation6], 4294967232  ;;  %v56_v0 = vlaneseq  ;;  %v38_v6 = vld [vmem:[#allocation2] sm:$0xff]  ;;  %v39_v8 = vld [vmem:[#allocation2 + $0x8] sm:$0xff]  ;;  %s201_s0 = smov [#allocation7]  }
  0x1d   :  { %v54_v7 = vld [vmem:[#allocation5] sm:$0xf]  ;;  %v40_v11 = vld [vmem:[#allocation2 + $0x10] sm:$0xff]  ;;  %v41_v13 = vld [vmem:[#allocation2 + $0x18] sm:$0xff]  ;;  %s113_s1 = sshll.u32 %s201_s0, 4  ;;  %s114_s1 = int_to_ptr.vmem [resolvable:$true] %s113_s1 }
  0x1e   :  { %v57_v1 = vshrl.u32 %v56_v0, 7  ;;  %v42_v15 = vld [vmem:[#allocation2 + $0x20] sm:$0xff]  ;;  %v43_v16 = vld [vmem:[#allocation2 + $0x28] sm:$0xff]  ;;  %v44_v17 = vld [vmem:[#allocation2 + $0x30] sm:$0xff]  ;;  %s171_s21 = scalar_lea.vmem %s114_s1, 2048  ;;  %p176_p11 = scmp.lt.s32.totalorder %s114_s1, %s114_s1 }
  0x1f   :  { %v45_v18 = vld [vmem:[#allocation2 + $0x38] sm:$0xff]  ;;  %v46_v23 = vld [vmem:[#allocation2 + $0x40] sm:$0xff]  ;;  %v47_v24 = vld [vmem:[#allocation2 + $0x48] sm:$0xff]  ;;  %p172_p10 = scmp.ne.s32.totalorder %s114_s1, %s171_s21  ;;  %p177_p12 = scmp.lt.s32.totalorder %s171_s21, %s171_s21 }
  0x20   :  { %v58_v2 = vsub.s32 0, %v57_v1  ;;  %v62_v3 = vsub.s32 1, %v57_v1  ;;  %v66_v4 = vsub.s32 2, %v57_v1  ;;  %v70_v5 = vsub.s32 3, %v57_v1  ;;  %v48_v25 = vld [vmem:[#allocation2 + $0x50] sm:$0xff]  ;;  %v49_v30 = vld [vmem:[#allocation2 + $0x58] sm:$0xff] }
  0x21   :  { %v50_v31 = vld [vmem:[#allocation2 + $0x60] sm:$0xff]  ;;  %v51_v32 = vld [vmem:[#allocation2 + $0x68] sm:$0xff]  ;;  %v52_v37 = vld [vmem:[#allocation2 + $0x70] sm:$0xff]  ;;  %p178_p13 = por %p177_p12, %p176_p11 }
  0x22   :  { %v59_v9 = vrot.slane %v54_v7, %v58_v2  ;;  %v63_v10 = vrot.slane %v54_v7, %v62_v3  ;;  %v67_v12 = vrot.slane %v54_v7, %v66_v4  ;;  %v71_v14 = vrot.slane %v54_v7, %v70_v5  ;;  %v53_v38 = vld [vmem:[#allocation2 + $0x78] sm:$0xff] }
  0x23   :  { %p179_p0 = pnand %p178_p13, %p172_p10 }
  0x24   :  { %v76_v19 = vmul.f32 %v59_v9, %v38_v6  ;;  %v77_v20 = vmul.f32 %v63_v10, %v39_v8  ;;  %v78_v21 = vmul.f32 %v67_v12, %v40_v11  ;;  %v79_v22 = vmul.f32 %v71_v14, %v41_v13 }
  0x25   :  { %v80_v26 = vmul.f32 %v59_v9, %v42_v15  ;;  %v81_v27 = vmul.f32 %v63_v10, %v43_v16  ;;  %v82_v28 = vmul.f32 %v67_v12, %v44_v17  ;;  %v83_v29 = vmul.f32 %v71_v14, %v45_v18 }
  0x26   :  { %92 = vst [vmem:[#allocation7] sm:$0xff] %v76_v19  ;;  %93 = vst [vmem:[#allocation7 + $0x8] sm:$0xff] %v77_v20  ;;  %v84_v33 = vmul.f32 %v59_v9, %v46_v23  ;;  %v85_v34 = vmul.f32 %v63_v10, %v47_v24  ;;  %v86_v35 = vmul.f32 %v67_v12, %v48_v25 }
  0x27   :  { %94 = vst [vmem:[#allocation7 + $0x10] sm:$0xff] %v78_v21  ;;  %95 = vst [vmem:[#allocation7 + $0x18] sm:$0xff] %v79_v22  ;;  %v87_v36 = vmul.f32 %v71_v14, %v49_v30  ;;  %v88_v39 = vmul.f32 %v59_v9, %v50_v31  ;;  %v89_v40 = vmul.f32 %v63_v10, %v51_v32 }
  0x28   :  { %96 = vst [vmem:[#allocation7 + $0x20] sm:$0xff] %v80_v26  ;;  %97 = vst [vmem:[#allocation7 + $0x28] sm:$0xff] %v81_v27  ;;  %v90_v41 = vmul.f32 %v67_v12, %v52_v37  ;;  %v91_v42 = vmul.f32 %v71_v14, %v53_v38 }
  0x29   :  { %98 = vst [vmem:[#allocation7 + $0x30] sm:$0xff] %v82_v28  ;;  %99 = vst [vmem:[#allocation7 + $0x38] sm:$0xff] %v83_v29 }
  0x2a   :  { %100 = vst [vmem:[#allocation7 + $0x40] sm:$0xff] %v84_v33  ;;  %101 = vst [vmem:[#allocation7 + $0x48] sm:$0xff] %v85_v34 }
  0x2b   :  { %102 = vst [vmem:[#allocation7 + $0x50] sm:$0xff] %v86_v35  ;;  %103 = vst [vmem:[#allocation7 + $0x58] sm:$0xff] %v87_v36 }
  0x2c   :  { %104 = vst [vmem:[#allocation7 + $0x60] sm:$0xff] %v88_v39  ;;  %105 = vst [vmem:[#allocation7 + $0x68] sm:$0xff] %v89_v40 }
  0x2d   :  { %106 = vst [vmem:[#allocation7 + $0x70] sm:$0xff] %v90_v41  ;;  %107 = vst [vmem:[#allocation7 + $0x78] sm:$0xff] %v91_v42 }
  0x2e   :  { %182 = shalt.err (!%p179_p0)
}
  0x2f   :  { %119 = dma.vmem_to_hbm [thread:$0]  %s114_s1, 2048, %s234_s2, [#allocation4], %s198_s12, %s198_s12, %s199_s13  }
  0x30   :  { %195 = dma.done.wait [#allocation4], 2048  }
  0x31   :  { %196 = vsyncadd [#allocation4], 4294965248 }
  0x32   :  { %123 = vsyncpa [#allocation3], 1 }
  0x33   :  { %124 = vsyncpa [#allocation6], 1 }
  0x34   :  { %125 = vsyncpa [#allocation4], 1 }

</bundles_post_ra>
